<compile_context>
chip_gen: v7x
topology: tpu7x:2x2x1
jax: 0.10.0
libtpu: 0.0.40
codegen_flags: <defaults>
</compile_context>

<pallas_src>
import functools

import jax
import jax.numpy as jnp
from jax.experimental import pallas as pl
from jax.experimental.pallas import tpu as pltpu


# ----------------------------------------------------------------------------
# Pass 1: conv (channel-contraction matmul) + per-(b, c) statistics.
# ----------------------------------------------------------------------------
def _conv_stats_kernel(xc_ref, w_ref, y_ref, sum_ref, sq_ref):
    @pl.when(pl.program_id(1) == 0)
    def _():
        sum_ref[...] = jnp.zeros_like(sum_ref)
        sq_ref[...] = jnp.zeros_like(sq_ref)

    # (Cout, K) @ (K, tS) -> (Cout, tS); f32 accumulation on the MXU.
    y = jnp.dot(w_ref[...], xc_ref[0], preferred_element_type=jnp.float32)

    # No bias here, so zero-padded spatial columns are exactly 0 and do not
    # pollute the statistics -> no lane masking needed.
    sum_ref[0] += jnp.sum(y, axis=1, keepdims=True)       # (Cout, 1)
    sq_ref[0] += jnp.sum(y * y, axis=1, keepdims=True)    # (Cout, 1)

    y_ref[0] = y.astype(y_ref.dtype)


# ----------------------------------------------------------------------------
# Pass 2: fused scale/shift (instance-norm or bias) + activation (streaming).
# ----------------------------------------------------------------------------
def _norm_act_kernel(y_ref, scale_ref, shift_ref, o_ref, *, act, negative_slope):
    z = y_ref[0].astype(jnp.float32) * scale_ref[0] + shift_ref[0]   # (Cout, tS)
    if act == "leaky_relu":
        z = jnp.where(z > 0, z, negative_slope * z)
    elif act == "relu":
        z = jnp.maximum(z, 0.0)
    elif act == "tanh":
        z = jnp.tanh(z)
    elif act == "sigmoid":
        z = jax.nn.sigmoid(z)
    else:
        raise ValueError(f"unknown activation: {act}")
    o_ref[0] = z.astype(o_ref.dtype)


# ----------------------------------------------------------------------------
# Wrapper
# ----------------------------------------------------------------------------
def _im2col_3d(x, kernel_size, stride, padding, dilation):
    """Tap-major im2col: returns (B, k^3 * Cin, Do*Ho*Wo) and output dims."""
    B, C, D, H, W = x.shape
    k, st, p, dl = kernel_size, stride, padding, dilation
    Do = (D + 2 * p - dl * (k - 1) - 1) // st + 1
    Ho = (H + 2 * p - dl * (k - 1) - 1) // st + 1
    Wo = (W + 2 * p - dl * (k - 1) - 1) // st + 1
    xp = jnp.pad(x, ((0, 0), (0, 0), (p, p), (p, p), (p, p)))
    cols = []
    for kd in range(k):
        for kh in range(k):
            for kw in range(k):
                sl = xp[:, :,
                        kd * dl: kd * dl + st * (Do - 1) + 1: st,
                        kh * dl: kh * dl + st * (Ho - 1) + 1: st,
                        kw * dl: kw * dl + st * (Wo - 1) + 1: st]
                cols.append(sl)
    patches = jnp.stack(cols, axis=1)                 # (B, k^3, Cin, Do, Ho, Wo)
    patches = patches.reshape(B, k ** 3 * C, Do * Ho * Wo)
    return patches, (Do, Ho, Wo)


def conv3d_forward(x, weight, bias, *, stride=1, padding=1, dilation=1,
                   instance_norm=True, act="leaky_relu",
                   eps=1e-5, negative_slope=0.01, tile_s=1024):
    """x: (B, Cin, D, H, W); weight: (Cout, Cin, k, k, k); bias: (Cout,)."""
    B, Cin, D, H, W = x.shape
    Cout, Cin_w, k, _, _ = weight.shape
    assert Cin == Cin_w

    patches, (Do, Ho, Wo) = _im2col_3d(x, k, stride, padding, dilation)
    K = k ** 3 * Cin
    S = Do * Ho * Wo

    # Adaptive lane-dense spatial tile: multiple of 128, capped so that the
    # double-buffered (K, tile_s) patch block stays within a small VMEM budget.
    itemsize = jnp.dtype(x.dtype).itemsize
    vmem_budget = 6 * 1024 * 1024
    cap = max(128, (vmem_budget // (2 * K * itemsize)) // 128 * 128)
    tile_s = max(128, min(tile_s, cap, pl.cdiv(S, 128) * 128))
    S_pad = pl.cdiv(S, tile_s) * tile_s
    if S_pad != S:
        patches = jnp.pad(patches, ((0, 0), (0, 0), (0, S_pad - S)))
    n_s = S_pad // tile_s

    # Weight flattened tap-major / cin-minor to match the patch layout.
    w2d = weight.transpose(0, 2, 3, 4, 1).reshape(Cout, K).astype(x.dtype)

    # ---- pass 1: conv (no bias) + per-(b, c) statistics ----------------------
    y, ssum, ssq = pl.pallas_call(
        _conv_stats_kernel,
        out_shape=(
            jax.ShapeDtypeStruct((B, Cout, S_pad), x.dtype),
            jax.ShapeDtypeStruct((B, Cout, 1), jnp.float32),
            jax.ShapeDtypeStruct((B, Cout, 1), jnp.float32),
        ),
        grid_spec=pltpu.PrefetchScalarGridSpec(
            num_scalar_prefetch=0,
            grid=(B, n_s),
            in_specs=[
                pl.BlockSpec((1, K, tile_s), lambda b, s: (b, 0, s)),
                pl.BlockSpec((Cout, K), lambda b, s: (0, 0)),
            ],
            out_specs=(
                pl.BlockSpec((1, Cout, tile_s), lambda b, s: (b, 0, s)),
                pl.BlockSpec((1, Cout, 1), lambda b, s: (b, 0, 0)),
                pl.BlockSpec((1, Cout, 1), lambda b, s: (b, 0, 0)),
            ),
        ),
        compiler_params=pltpu.CompilerParams(
            dimension_semantics=("parallel", "arbitrary")),
    )(patches, w2d)

    # ---- tiny per-(b, c) scalar math stays in plain JAX ----------------------
    b_col = bias.astype(jnp.float32).reshape(1, Cout, 1)
    if instance_norm:
        mean = ssum / S
        var = jnp.maximum(ssq / S - mean * mean, 0.0)     # biased variance
        rstd = jax.lax.rsqrt(var + eps)
        scale = rstd
        shift = -mean * rstd          # conv bias cancels exactly under the norm
    else:
        scale = jnp.ones((B, Cout, 1), jnp.float32)
        shift = jnp.broadcast_to(b_col, (B, Cout, 1))

    # ---- pass 2: fused scale/shift + activation -------------------------------
    kern2 = functools.partial(_norm_act_kernel, act=act,
                              negative_slope=negative_slope)
    out = pl.pallas_call(
        kern2,
        out_shape=jax.ShapeDtypeStruct((B, Cout, S_pad), x.dtype),
        grid_spec=pltpu.PrefetchScalarGridSpec(
            num_scalar_prefetch=0,
            grid=(B, n_s),
            in_specs=[
                pl.BlockSpec((1, Cout, tile_s), lambda b, s: (b, 0, s)),
                pl.BlockSpec((1, Cout, 1), lambda b, s: (b, 0, 0)),
                pl.BlockSpec((1, Cout, 1), lambda b, s: (b, 0, 0)),
            ],
            out_specs=pl.BlockSpec((1, Cout, tile_s), lambda b, s: (b, 0, s)),
        ),
        compiler_params=pltpu.CompilerParams(
            dimension_semantics=("parallel", "parallel")),
    )(y, scale, shift)

    return out[:, :, :S].reshape(B, Cout, Do, Ho, Wo)


# ----------------------------------------------------------------------------
# Pure-JAX reference (mirrors Conv3d -> InstanceNorm3d(affine=False) -> LeakyReLU)
# ----------------------------------------------------------------------------
def _reference(x, w, b, *, eps=1e-5, negative_slope=0.01):
    y = jax.lax.conv_general_dilated(
        x, w, window_strides=(1, 1, 1),
        padding=((1, 1), (1, 1), (1, 1)),
        dimension_numbers=("NCDHW", "OIDHW", "NCDHW"))
    y = y + b[None, :, None, None, None]
    mean = jnp.mean(y, axis=(2, 3, 4), keepdims=True)
    var = jnp.mean((y - mean) ** 2, axis=(2, 3, 4), keepdims=True)
    z = (y - mean) * jax.lax.rsqrt(var + eps)
    return jnp.where(z > 0, z, negative_slope * z)


def _run_case(key, B, Cin, Cout, D, H, W):
    k = 3
    kx, kw, kb = jax.random.split(key, 3)
    x = jax.random.normal(kx, (B, Cin, D, H, W), dtype=jnp.float32)
    # PyTorch Conv3d init bounds: U(-1/sqrt(fan_in), 1/sqrt(fan_in)), fan_in = Cin*k^3
    bound = 1.0 / ((Cin * k ** 3) ** 0.5)
    w = jax.random.uniform(kw, (Cout, Cin, k, k, k), jnp.float32, -bound, bound)
    b = jax.random.uniform(kb, (Cout,), jnp.float32, -bound, bound)

    out = jax.block_until_ready(conv3d_forward(x, w, b))
    ref = _reference(x, w, b)
    assert out.shape == ref.shape
    max_err = float(jnp.max(jnp.abs(out - ref)))
    assert jnp.allclose(out, ref, atol=1e-4, rtol=1e-4), \
        f"mismatch vs reference (max abs err {max_err})"


if __name__ == "__main__":
    # Defaults consistent with the module: in_channels=4, out_channels=8,
    # kernel=3, stride=1, padding=1, dilation=1, instance_norm=True,
    # act='leaky_relu'; batch=2, spatial 8x8x8.
    key = jax.random.PRNGKey(0)
    k1, k2 = jax.random.split(key)
    _run_case(k1, B=2, Cin=4, Cout=8, D=8, H=8, W=8)
    # Odd shapes: exercises the spatial-padding path (S not a multiple of 128).
    _run_case(k2, B=1, Cin=3, Cout=6, D=5, H=6, W=7)
    print("KERNEL_OK")
</pallas_src>

<mosaic_0001>
module attributes {stable_mosaic.version = 11 : i64} {
  func.func @_conv_stats_kernel(%arg0: i32, %arg1: i32, %arg2: memref<1x108x512xf32, #tpu.memory_space<vmem>>, %arg3: memref<8x108xf32, #tpu.memory_space<vmem>>, %arg4: memref<1x8x512xf32, #tpu.memory_space<vmem>>, %arg5: memref<1x8x1xf32, #tpu.memory_space<vmem>>, %arg6: memref<1x8x1xf32, #tpu.memory_space<vmem>>) attributes {dimension_semantics = [#tpu.dimension_semantics<parallel>, #tpu.dimension_semantics<arbitrary>], iteration_bounds = array<i64: 2, 1>, scalar_prefetch = 0 : i64, scratch_operands = 0 : i64, tpu.core_type = #tpu.core_type<tc>, window_params = [{transform_indices = @transform_0, window_bounds = array<i64: 1, 108, 512>}, {pipeline_mode = #tpu.pipeline_mode<synchronous>, transform_indices = @transform_1, window_bounds = array<i64: 8, 108>}, {transform_indices = @transform_2, window_bounds = array<i64: 1, 8, 512>}, {transform_indices = @transform_3, window_bounds = array<i64: 1, 8, 1>}, {transform_indices = @transform_4, window_bounds = array<i64: 1, 8, 1>}]} {
    %c0_i32 = arith.constant 0 : i32
    %0 = arith.cmpi eq, %arg1, %c0_i32 : i32
    %1 = arith.extui %0 : i1 to i32
    %c0_i32_0 = arith.constant 0 : i32
    %2 = arith.cmpi ne, %1, %c0_i32_0 : i32
    scf.if %2 {
      %cst_22 = arith.constant 0.000000e+00 : f32
      %27 = vector.broadcast %cst_22 : f32 to vector<1x8x1xf32>
      %c0_23 = arith.constant 0 : index
      %c0_24 = arith.constant 0 : index
      %c0_25 = arith.constant 0 : index
      %28 = vector.load %arg5[%c0_23, %c0_24, %c0_25] : memref<1x8x1xf32, #tpu.memory_space<vmem>>, vector<1x8x1xf32>
      tpu.vector_store %arg5[%c0_23, %c0_24, %c0_25], %27 {strides = array<i32>} : memref<1x8x1xf32, #tpu.memory_space<vmem>>, vector<1x8x1xf32>,
      %cst_26 = arith.constant 0.000000e+00 : f32
      %29 = vector.broadcast %cst_26 : f32 to vector<1x8x1xf32>
      %c0_27 = arith.constant 0 : index
      %c0_28 = arith.constant 0 : index
      %c0_29 = arith.constant 0 : index
      %30 = vector.load %arg6[%c0_27, %c0_28, %c0_29] : memref<1x8x1xf32, #tpu.memory_space<vmem>>, vector<1x8x1xf32>
      tpu.vector_store %arg6[%c0_27, %c0_28, %c0_29], %29 {strides = array<i32>} : memref<1x8x1xf32, #tpu.memory_space<vmem>>, vector<1x8x1xf32>,
    } else {
    }
    %c0 = arith.constant 0 : index
    %c0_1 = arith.constant 0 : index
    %3 = vector.load %arg3[%c0, %c0_1] : memref<8x108xf32, #tpu.memory_space<vmem>>, vector<8x108xf32>
    %c0_2 = arith.constant 0 : index
    %c0_3 = arith.constant 0 : index
    %c0_4 = arith.constant 0 : index
    %4 = vector.load %arg2[%c0_2, %c0_3, %c0_4] : memref<1x108x512xf32, #tpu.memory_space<vmem>>, vector<1x108x512xf32>
    %5 = vector.shape_cast %4 : vector<1x108x512xf32> to vector<108x512xf32>
    %cst = arith.constant dense<0.000000e+00> : vector<8x512xf32>
    %6 = tpu.matmul %3, %5, %cst {dimension_numbers = #tpu.dot_dimension_numbers<[1], [0], [0], [1], [0, 0, 1, 1], [], []>} : vector<8x108xf32>, vector<108x512xf32>, vector<8x512xf32> -> vector<8x512xf32>
    %c0_5 = arith.constant 0 : index
    %c0_6 = arith.constant 0 : index
    %c0_7 = arith.constant 0 : index
    %7 = vector.load %arg5[%c0_5, %c0_6, %c0_7] : memref<1x8x1xf32, #tpu.memory_space<vmem>>, vector<1x8x1xf32>
    %8 = vector.shape_cast %7 : vector<1x8x1xf32> to vector<8x1xf32>
    %cst_8 = arith.constant dense<0.000000e+00> : vector<8xf32>
    %9 = vector.multi_reduction <add>, %6, %cst_8 [1] : vector<8x512xf32> to vector<8xf32>
    %10 = vector.shape_cast %9 : vector<8xf32> to vector<8x1xf32>
    %11 = arith.addf %8, %10 : vector<8x1xf32>
    %c0_9 = arith.constant 0 : index
    %c0_10 = arith.constant 0 : index
    %c0_11 = arith.constant 0 : index
    %12 = vector.load %arg5[%c0_9, %c0_10, %c0_11] : memref<1x8x1xf32, #tpu.memory_space<vmem>>, vector<1x8x1xf32>
    %13 = vector.shape_cast %12 : vector<1x8x1xf32> to vector<8x1xf32>
    %14 = vector.shape_cast %11 : vector<8x1xf32> to vector<1x8x1xf32>
    tpu.vector_store %arg5[%c0_9, %c0_10, %c0_11], %14 {strides = array<i32>} : memref<1x8x1xf32, #tpu.memory_space<vmem>>, vector<1x8x1xf32>,
    %c0_12 = arith.constant 0 : index
    %c0_13 = arith.constant 0 : index
    %c0_14 = arith.constant 0 : index
    %15 = vector.load %arg6[%c0_12, %c0_13, %c0_14] : memref<1x8x1xf32, #tpu.memory_space<vmem>>, vector<1x8x1xf32>
    %16 = vector.shape_cast %15 : vector<1x8x1xf32> to vector<8x1xf32>
    %17 = arith.mulf %6, %6 : vector<8x512xf32>
    %cst_15 = arith.constant dense<0.000000e+00> : vector<8xf32>
    %18 = vector.multi_reduction <add>, %17, %cst_15 [1] : vector<8x512xf32> to vector<8xf32>
    %19 = vector.shape_cast %18 : vector<8xf32> to vector<8x1xf32>
    %20 = arith.addf %16, %19 : vector<8x1xf32>
    %c0_16 = arith.constant 0 : index
    %c0_17 = arith.constant 0 : index
    %c0_18 = arith.constant 0 : index
    %21 = vector.load %arg6[%c0_16, %c0_17, %c0_18] : memref<1x8x1xf32, #tpu.memory_space<vmem>>, vector<1x8x1xf32>
    %22 = vector.shape_cast %21 : vector<1x8x1xf32> to vector<8x1xf32>
    %23 = vector.shape_cast %20 : vector<8x1xf32> to vector<1x8x1xf32>
    tpu.vector_store %arg6[%c0_16, %c0_17, %c0_18], %23 {strides = array<i32>} : memref<1x8x1xf32, #tpu.memory_space<vmem>>, vector<1x8x1xf32>,
    %c0_19 = arith.constant 0 : index
    %c0_20 = arith.constant 0 : index
    %c0_21 = arith.constant 0 : index
    %24 = vector.load %arg4[%c0_19, %c0_20, %c0_21] : memref<1x8x512xf32, #tpu.memory_space<vmem>>, vector<1x8x512xf32>
    %25 = vector.shape_cast %24 : vector<1x8x512xf32> to vector<8x512xf32>
    %26 = vector.shape_cast %6 : vector<8x512xf32> to vector<1x8x512xf32>
    tpu.vector_store %arg4[%c0_19, %c0_20, %c0_21], %26 {strides = array<i32>} : memref<1x8x512xf32, #tpu.memory_space<vmem>>, vector<1x8x512xf32>,
    return
  }
  func.func @transform_0(%arg0: i32, %arg1: i32) -> (i32, i32, i32) {
    %c0_i32 = arith.constant 0 : i32
    %c0_i32_0 = arith.constant 0 : i32
    return %arg0, %c0_i32, %arg1 : i32, i32, i32
  }
  func.func @transform_1(%arg0: i32, %arg1: i32) -> (i32, i32) {
    %c0_i32 = arith.constant 0 : i32
    %c0_i32_0 = arith.constant 0 : i32
    %c0_i32_1 = arith.constant 0 : i32
    return %c0_i32, %c0_i32_0 : i32, i32
  }
  func.func @transform_2(%arg0: i32, %arg1: i32) -> (i32, i32, i32) {
    %c0_i32 = arith.constant 0 : i32
    %c0_i32_0 = arith.constant 0 : i32
    return %arg0, %c0_i32, %arg1 : i32, i32, i32
  }
  func.func @transform_3(%arg0: i32, %arg1: i32) -> (i32, i32, i32) {
    %c0_i32 = arith.constant 0 : i32
    %c0_i32_0 = arith.constant 0 : i32
    %c0_i32_1 = arith.constant 0 : i32
    return %arg0, %c0_i32, %c0_i32_0 : i32, i32, i32
  }
  func.func @transform_4(%arg0: i32, %arg1: i32) -> (i32, i32, i32) {
    %c0_i32 = arith.constant 0 : i32
    %c0_i32_0 = arith.constant 0 : i32
    %c0_i32_1 = arith.constant 0 : i32
    return %arg0, %c0_i32, %c0_i32_0 : i32, i32, i32
  }
}

</mosaic_0001>

<bundles_post_ra>
// kernel: tpu_custom_call.1
= control target key start
LH: loop header
LB: loop body
LE: loop exit
PB: predicated region body
PF: predicated region fallthrough
CT: control target
= control target key end

     0   :  { %10 = vsyncpa [#allocation3], 0  ;;  %s1093_s0 = inlined_call_operand.vmem [shape: f32[2,108,512], index: 0, kind: input, shape index: {}]   ;;  %s1094_s1 = inlined_call_operand.vmem [shape: f32[8,108], index: 1, kind: input, shape index: {}]   ;;  %s1095_s2 = inlined_call_operand.hbm [shape: f32[2,8,512], index: 2, kind: output, shape index: {0}]   ;;  %s1096_s3 = inlined_call_operand.vmem [shape: f32[2,8,1], index: 3, kind: output, shape index: {1}]   ;;  %s1097_s4 = inlined_call_operand.vmem [shape: f32[2,8,1], index: 4, kind: output, shape index: {2}]  }
   0x1   :  { %12 = vsyncpa [#allocation3 + $0x1], 0  ;;  %s898_s15 = smov 0   ;;  %s900_s16 = smov 0  }
   0x2   :  { %s902_s17 = smov 0   ;;  %s904_s18 = smov 0  }
   0x3   :  { %s906_s19 = smov 0   ;;  %s908_s20 = smov 0  }
   0x4 LB: > { %s651_s21 = sadd.s32 4294967295, %s868_s20   ;;  %s652_s22 = sadd.s32 4294967294, %s868_s20   ;;  %s868_s20 = sphi %s908_s20, %s18_s20   ;;  %s864_s19 = sphi %s906_s19, %s1104_s19   ;;  %s860_s18 = sphi %s904_s18, %s1103_s18   ;;  %s856_s17 = sphi %s902_s17, %s1102_s17   ;;  %s852_s16 = sphi %s900_s16, %s1101_s16   ;;  %s848_s15 = sphi %s898_s15, %s1100_s15  }
   0x5   : > { %s30_s23 = sadd.s32 1, %s864_s19  ;;  %s88_s24 = sadd.s32 1, %s856_s17 }
   0x6   : > { %p32_p0 = scmp.ge.s32.totalorder %s30_s23, 2  ;;  %p98_p1 = scmp.ne.s32.totalorder %s856_s17, %s852_s16 }
   0x7   : > { %p99_p2 = scmp.eq.s32.totalorder %s651_s21, 1  ;;  %p104_p3 = scmp.ne.s32.totalorder %s852_s16, %s848_s15 }
   0x8   : > { %s1106_s23 = smov (%p32_p0, %s30_s23), 0  ;;  %p105_p5 = scmp.eq.s32.totalorder %s652_s22, 1 }
   0x9   : > { %p938_p4 = por %p99_p2, %p98_p1  ;;  %s83_s26 = ssub.s32 %s864_s19, %s1106_s23 }
   0xa   : > { %p655_p6 = scmp.ge.s32.totalorder %s868_s20, 1  ;;  %p86_p7 = scmp.eq.s32.totalorder %s83_s26, 0 }
   0xb   : > { %p945_p8 = por %p105_p5, %p104_p3  ;;  %p191_p9 = scmp.lt.s32.totalorder %s868_s20, 3 }
   0xc   : > { %s951_s28 = scalar_select %p86_p7, %s856_s17, %s88_s24  }
   0xd   : > { %p192_p10 = pnand %p655_p6, %p191_p9 }
   0xe   : > { %p230_p11 = scmp.lt.s32.totalorder (!%p192_p10), %s860_s18, 1  ;;  %v870_v0 = vmov (!%p192_p10), 0.0   ;;  %vm316_vm0 = vcmask (!%p192_p10), 1043456   ;;  %vm871_vm1 = vmmov (!%p192_p10), 1   ;;  %vm312_vm3 = vcmask (!%p192_p10), 883712   ;;  %s214_s14 = sand.u32 (!%p192_p10), 1, %s852_s16  }
   0xf   : > { %195 = sbr.rel (%p192_p10) target bundleno = 427 (0x1ab), region = 28  ;;  %393 = vmatprep.mubr.f32.mxu0 (!%p192_p10), %v870_v0  ;;  %464 = vmatprep.mubr.f32.mxu1 (!%p192_p10), %v870_v0  ;;  %vm697_vm2 = vmpackc.low (!%p192_p10), %vm316_vm0, %vm871_vm1  ;;  %vm252_vm4 = vcmask (!%p192_p10), 7168   ;;  %s656_s21 = sshll.u32 (!%p192_p10), %s214_s14, 5 }
  0x10   : > { %s216_s22 = scalar_lea.vmem (!%p192_p10), [#allocation2], %s656_s21  ;;  %s497_s9 = scalar_lea.sflag (!%p192_p10), [#allocation3], %s214_s14 }
  0x11   : > { %s521_s5 = sshll.u32 (!%p192_p10), %s216_s22, 4  ;;  %s522_s5 = int_to_ptr.vmem [resolvable:$true] %s521_s5 }
  0x12   : > { %s790_s11 = scalar_lea.vmem (!%p192_p10), %s522_s5, 512 }
  0x13   : > { %p791_p12 = scmp.ne.s32.totalorder (!%p192_p10), %s522_s5, %s790_s11 }
  0x15   : > { %p792_p13 = pnand (!%p192_p10), %p791_p12, %p938_p4 }
  0x16   : > { %s957_s29 = scalar_select %p230_p11, %s860_s18, 1 }
  0x17   : > { %p793_p0 = pneg %p792_p13 }
  0x18   : > { %s732_s30 = smul.u32 448, %s957_s29  ;;  %s658_s10 = sshll.u32 %s957_s29, 3 }
  0x19   : > { %s1028_s13 = scalar_lea.vmem %s1096_s3, %s658_s10  ;;  %s1037_s29 = scalar_lea.vmem %s1097_s4, %s658_s10 }
  0x1a   : > { %s963_s7 = scalar_lea.vmem %s1093_s0, %s732_s30  ;;  %253 = vst.msk [vmem:[%s1028_s13] sm:$0xff] %vm252_vm4, %v870_v0  ;;  %254 = vst.msk [vmem:[%s1037_s29] sm:$0xff] %vm252_vm4, %v870_v0  ;;  %s671_s30 = sshll.u32 %s860_s18, 9 }
  0x1b   : > { %v257_v1 = vld [vmem:[%s963_s7 + $0x8] sm:$0xff]  ;;  %v256_v3 = vld [vmem:[%s963_s7] sm:$0xff]  ;;  %v259_v6 = vld [vmem:[%s963_s7 + $0x18] sm:$0xff]  ;;  %s1046_s8 = scalar_lea.hbm %s1095_s2, %s671_s30  ;;  %s872_s10 = smov [#allocation2]  }
  0x1c   : > { %v261_v2 = vld [vmem:[%s963_s7 + $0x28] sm:$0xff]  ;;  %v260_v5 = vld [vmem:[%s963_s7 + $0x20] sm:$0xff]  ;;  %v263_v7 = vld [vmem:[%s963_s7 + $0x38] sm:$0xff]  ;;  %s794_s12 = sshll.u32 %s872_s10, 4  ;;  %s795_s12 = int_to_ptr.vmem [resolvable:$false] %s794_s12 }
  0x1d   : > { %v672_v4 = vpack.c.bf16 %v261_v2, %v257_v1  ;;  %v674_v8 = vpack.c.bf16 %v260_v5, %v256_v3  ;;  %v702_v9 = vpack.c.bf16 %v263_v7, %v259_v6  ;;  %v258_v10 = vld [vmem:[%s963_s7 + $0x10] sm:$0xff]  ;;  %v265_v12 = vld [vmem:[%s963_s7 + $0x48] sm:$0xff]  ;;  %v264_v15 = vld [vmem:[%s963_s7 + $0x40] sm:$0xff]  ;;  %s796_s21 = scalar_lea.vmem %s795_s12, 1024  ;;  %p797_p1 = scmp.lt.s32.totalorder %s522_s5, %s795_s12 }
  0x1e   : > { %v262_v11 = vld [vmem:[%s963_s7 + $0x30] sm:$0xff]  ;;  %v269_v14 = vld [vmem:[%s963_s7 + $0x68] sm:$0xff]  ;;  %v268_v16 = vld [vmem:[%s963_s7 + $0x60] sm:$0xff]  ;;  %p798_p2 = scmp.lt.s32.totalorder %s796_s21, %s790_s11 }
  0x1f   : > { %673 = vmatprep.subr.bf16.mxu0 %v672_v4  ;;  %v704_v13 = vpack.c.bf16 %v262_v11, %v258_v10  ;;  %703 = vmatprep.subr.bf16.mxu1 %v702_v9  ;;  %v676_v17 = vpack.c.bf16 %v269_v14, %v265_v12  ;;  %v678_v18 = vpack.c.bf16 %v268_v16, %v264_v15  ;;  %v267_v19 = vld [vmem:[%s963_s7 + $0x58] sm:$0xff]  ;;  %v266_v21 = vld [vmem:[%s963_s7 + $0x50] sm:$0xff]  ;;  %v273_v24 = vld [vmem:[%s963_s7 + $0x88] sm:$0xff] }
  0x20   : > { %675 = vmatpush1.bf16.msra.mxu0 %v674_v8  ;;  %v271_v20 = vld [vmem:[%s963_s7 + $0x78] sm:$0xff]  ;;  %v270_v23 = vld [vmem:[%s963_s7 + $0x70] sm:$0xff]  ;;  %v277_v25 = vld [vmem:[%s963_s7 + $0xa8] sm:$0xff]  ;;  %p799_p3 = por %p798_p2, %p797_p1 }
  0x21   : > { %705 = vmatpush1.bf16.msra.mxu1 %v704_v13  ;;  %v706_v22 = vpack.c.bf16 %v271_v20, %v267_v19  ;;  %677 = vmatprep.subr.bf16.mxu0 %v676_v17  ;;  %v708_v26 = vpack.c.bf16 %v270_v23, %v266_v21  ;;  %v680_v27 = vpack.c.bf16 %v277_v25, %v273_v24  ;;  %v272_v28 = vld [vmem:[%s963_s7 + $0x80] sm:$0xff]  ;;  %v275_v30 = vld [vmem:[%s963_s7 + $0x98] sm:$0xff]  ;;  %v274_v32 = vld [vmem:[%s963_s7 + $0x90] sm:$0xff] }
  0x22   : > { %v276_v29 = vld [vmem:[%s963_s7 + $0xa0] sm:$0xff]  ;;  %v279_v31 = vld [vmem:[%s963_s7 + $0xb8] sm:$0xff]  ;;  %v278_v33 = vld [vmem:[%s963_s7 + $0xb0] sm:$0xff]  ;;  %p800_p5 = pnand %p799_p3, %p793_p0 }
  0x23   : > { %707 = vmatprep.subr.bf16.mxu1 %v706_v22  ;;  %v682_v34 = vpack.c.bf16 %v276_v29, %v272_v28  ;;  %v710_v35 = vpack.c.bf16 %v279_v31, %v275_v30  ;;  %v281_v36 = vld [vmem:[%s963_s7 + $0xc8] sm:$0xff]  ;;  %v280_v38 = vld [vmem:[%s963_s7 + $0xc0] sm:$0xff]  ;;  %v712_v39 = vpack.c.bf16 %v278_v33, %v274_v32  ;;  %v283_v42 = vld [vmem:[%s963_s7 + $0xd8] sm:$0xff] }
  0x24   : > { %679 = vmatpush1.bf16.msra.mxu0 %v678_v18  ;;  %v285_v37 = vld [vmem:[%s963_s7 + $0xe8] sm:$0xff]  ;;  %v284_v41 = vld [vmem:[%s963_s7 + $0xe0] sm:$0xff]  ;;  %v287_v43 = vld [vmem:[%s963_s7 + $0xf8] sm:$0xff] }
  0x25   : > { %709 = vmatpush1.bf16.msra.mxu1 %v708_v26  ;;  %681 = vmatprep.subr.bf16.mxu0 %v680_v27  ;;  %v684_v40 = vpack.c.bf16 %v285_v37, %v281_v36  ;;  %v714_v44 = vpack.c.bf16 %v287_v43, %v283_v42  ;;  %v282_v45 = vld [vmem:[%s963_s7 + $0xd0] sm:$0xff]  ;;  %v289_v47 = vld [vmem:[%s963_s7 + $0x108] sm:$0xff]  ;;  %v686_v49 = vpack.c.bf16 %v284_v41, %v280_v38  ;;  %v291_v50 = vld [vmem:[%s963_s7 + $0x118] sm:$0xff] }
  0x26   : > { %711 = vmatprep.subr.bf16.mxu1 %v710_v35  ;;  %v286_v46 = vld [vmem:[%s963_s7 + $0xf0] sm:$0xff]  ;;  %v293_v48 = vld [vmem:[%s963_s7 + $0x128] sm:$0xff]  ;;  %v295_v51 = vld [vmem:[%s963_s7 + $0x138] sm:$0xff] }
  0x27   : > { %v716_v52 = vpack.c.bf16 %v286_v46, %v282_v45  ;;  %v688_v53 = vpack.c.bf16 %v293_v48, %v289_v47  ;;  %v288_v54 = vld [vmem:[%s963_s7 + $0x100] sm:$0xff]  ;;  %v290_v56 = vld [vmem:[%s963_s7 + $0x110] sm:$0xff]  ;;  %v718_v57 = vpack.c.bf16 %v295_v51, %v291_v50  ;;  %v297_v59 = vld [vmem:[%s963_s7 + $0x148] sm:$0xff] }
  0x28   : > { %683 = vmatpush1.bf16.msra.mxu0 %v682_v34  ;;  %v292_v55 = vld [vmem:[%s963_s7 + $0x120] sm:$0xff]  ;;  %v294_v58 = vld [vmem:[%s963_s7 + $0x130] sm:$0xff]  ;;  %v301_v60 = vld [vmem:[%s963_s7 + $0x168] sm:$0xff] }
  0x29   : > { %713 = vmatpush1.bf16.msra.mxu1 %v712_v39  ;;  %685 = vmatprep.subr.bf16.mxu0 %v684_v40  ;;  %v299_v61 = vld [vmem:[%s963_s7 + $0x158] sm:$0xff]  ;;  %v690_v63 = vpack.c.bf16 %v292_v55, %v288_v54  ;;  %v720_v1 = vpack.c.bf16 %v294_v58, %v290_v56  ;;  %v692_v2 = vpack.c.bf16 %v301_v60, %v297_v59  ;;  %v296_v3 = vld [vmem:[%s963_s7 + $0x140] sm:$0xff]  ;;  %v298_v5 = vld [vmem:[%s963_s7 + $0x150] sm:$0xff] }
  0x2a   : > { %715 = vmatprep.subr.bf16.mxu1 %v714_v44  ;;  %v303_v62 = vld [vmem:[%s963_s7 + $0x178] sm:$0xff]  ;;  %v300_v4 = vld [vmem:[%s963_s7 + $0x160] sm:$0xff]  ;;  %v302_v7 = vld [vmem:[%s963_s7 + $0x170] sm:$0xff] }
  0x2b   : > { %v722_v6 = vpack.c.bf16 %v303_v62, %v299_v61  ;;  %v305_v8 = vld [vmem:[%s963_s7 + $0x188] sm:$0xff]  ;;  %v307_v10 = vld [vmem:[%s963_s7 + $0x198] sm:$0xff]  ;;  %v694_v12 = vpack.c.bf16 %v300_v4, %v296_v3  ;;  %v724_v13 = vpack.c.bf16 %v302_v7, %v298_v5  ;;  %v304_v15 = vld [vmem:[%s963_s7 + $0x180] sm:$0xff] }
  0x2c   : > { %687 = vmatpush1.bf16.msra.mxu0 %v686_v49  ;;  %v309_v9 = vld [vmem:[%s963_s7 + $0x1a8] sm:$0xf]  ;;  %v311_v11 = vld [vmem:[%s963_s7 + $0x1b8] sm:$0xf]  ;;  %v308_v16 = vld [vmem:[%s963_s7 + $0x1a0] sm:$0xf] }
  0x2d   : > { %717 = vmatpush1.bf16.msra.mxu1 %v716_v52  ;;  %689 = vmatprep.subr.bf16.mxu0 %v688_v53  ;;  %v696_v14 = vpack.c.bf16 %v309_v9, %v305_v8  ;;  %v726_v17 = vpack.c.bf16 %v311_v11, %v307_v10  ;;  %v306_v18 = vld [vmem:[%s963_s7 + $0x190] sm:$0xff]  ;;  %v699_v20 = vpack.c.bf16 %v308_v16, %v304_v15  ;;  %v255_v22 = vld [vmem:[%s1094_s1] sm:$0xff] }
  0x2e   : > { %719 = vmatprep.subr.bf16.mxu1 %v718_v57  ;;  %v310_v19 = vld [vmem:[%s963_s7 + $0x1b0] sm:$0xf] }
  0x2f   : > { %v729_v21 = vpack.c.bf16 %v310_v19, %v306_v18 }
  0x30   : > { %691 = vmatpush1.bf16.msra.mxu0 %v690_v63 }
  0x31   : > { %721 = vmatpush1.bf16.msra.mxu1 %v720_v1  ;;  %693 = vmatprep.subr.bf16.mxu0 %v692_v2 }
  0x32   : > { %723 = vmatprep.subr.bf16.mxu1 %v722_v6 }
  0x34   : > { %695 = vmatpush1.bf16.msra.mxu0 %v694_v12 }
  0x35   : > { %725 = vmatpush1.bf16.msra.mxu1 %v724_v13  ;;  %698 = vmatprep.subr.msk.bf16.mxu0 %vm697_vm2, %v696_v14 }
  0x36   : > { %728 = vmatprep.subr.msk.bf16.mxu1 %vm697_vm2, %v726_v17 }
  0x38   : > { %701 = vmatpush1.bf16.msk.msra.mxu0 %vm697_vm2, %v699_v20 }
  0x39   : > { %731 = vmatpush1.bf16.msk.msra.mxu1 %vm697_vm2, %v729_v21 }
  0x3b   : > { %662 = vmatmul.mubr.msk.f32.vlgmr.msra.gmra.mrb[0].mxu0 %vm312_vm3, %v255_v22 }
  0x3c   : > { %665 = vmatmul.mubr.msk.f32.vlgmr.msra.gmra.mrb[0].mxu1 %vm312_vm3, %v255_v22 }
 0x10e   : > { %v395_v23 = vpop.f32.mrb[0].mxu0 }
 0x10f   : > { %v481_v24 = vmul.f32 %v395_v23, %v395_v23  ;;  %492 = vst [vmem:[%s216_s22] sm:$0xff] %v395_v23  ;;  %v397_v25 = vpop.f32.mrb[1].mxu0  ;;  %v466_v26 = vpop.f32.mrb[0].mxu1 }
 0x110   : > { %v472_v27 = vadd.f32 %v397_v25, %v395_v23  ;;  %v482_v28 = vmul.f32 %v397_v25, %v397_v25  ;;  %493 = vst [vmem:[%s216_s22 + $0x8] sm:$0xff] %v397_v25  ;;  %v483_v29 = vmul.f32 %v466_v26, %v466_v26  ;;  %494 = vst [vmem:[%s216_s22 + $0x10] sm:$0xff] %v466_v26  ;;  %v468_v30 = vpop.f32.mrb[1].mxu1 }
 0x111   : > { %495 = vst [vmem:[%s216_s22 + $0x18] sm:$0xff] %v468_v30  ;;  %v484_v33 = vmul.f32 %v468_v30, %v468_v30 }
 0x112   : > { %v485_v31 = vadd.f32 %v482_v28, %v481_v24  ;;  %v473_v32 = vadd.f32 %v472_v27, %v466_v26 }
 0x114   : > { %v474_v34 = vadd.f32 %v473_v32, %v468_v30  ;;  %v486_v35 = vadd.f32 %v485_v31, %v483_v29 }
 0x116   : > { %475 = vadd.xlane.f32.xlu0 %v474_v34  ;;  %v487_v36 = vadd.f32 %v486_v35, %v484_v33 }
 0x11a   : > { %488 = vadd.xlane.f32.xlu0 %v487_v36 }
 0x11b   : > { %803 = shalt.err (!%p800_p5)
}
 0x11c   : > { %s804_s18 = scalar_lea.hbm %s1046_s8, 512  ;;  %s808_s24 = scalar_lea.hbm %s1095_s2, 1024 }
 0x11d   : > { %p805_p6 = scmp.ne.s32.totalorder %s1046_s8, %s804_s18  ;;  %p809_p10 = scmp.lt.u32.totalorder %s1046_s8, %s1095_s2 }
 0x11e   : > { %p810_p11 = scmp.lt.u32.totalorder %s808_s24, %s804_s18  ;;  %p812_p13 = scmp.lt.u32.totalorder %s804_s18, %s1046_s8 }
 0x11f   : > { %p806_p7 = pnand %p805_p6, %p938_p4 }
 0x120   : > { %p811_p12 = por %p810_p11, %p809_p10 }
 0x121   : > { %p807_p9 = pneg %p806_p7 }
 0x122   : > { %p813_p0 = por %p812_p13, %p811_p12 }
 0x124   : > { %p814_p1 = pnand %p813_p0, %p807_p9 }
 0x126   : > { %817 = shalt.err (!%p814_p1)
}
 0x127   : > { %733 = dma.vmem_to_hbm [thread:$0]  (%p938_p4), %s522_s5, 512, %s1046_s8, %s497_s9   ;;  %v471_v0 = vld [vmem:[%s1028_s13] sm:$0xff] }
 0x128   : > { %v480_v39 = vld [vmem:[%s1037_s29] sm:$0xff] }
 0x1a3   : > { %v476_v37 = vpop.xlane.xlu0 %475 }
 0x1a4   : > { %v477_v38 = vadd.f32 %v476_v37, %v471_v0 }
 0x1a6   : > { %479 = vst.msk [vmem:[%s1028_s13] sm:$0xff] %vm252_vm4, %v477_v38 }
 0x1a7   : > { %v489_v40 = vpop.xlane.xlu0 %488 }
 0x1a8   : > { %v490_v41 = vadd.f32 %v489_v40, %v480_v39 }
 0x1aa   : > { %491 = vst.msk [vmem:[%s1037_s29] sm:$0xff] %vm252_vm4, %v490_v41 }
 0x1ab PF: > { %p739_p2 = scmp.ge.s32.totalorder %s868_s20, 2  ;;  %s539_s25 = sand.u32 1, %s848_s15  }
 0x1ac   : > { %s540_s6 = scalar_lea.sflag [#allocation3], %s539_s25 }
 0x1ad   : > { %p736_p3 = pnand %p739_p2, %p945_p8 }
 0x1af   : > { %843 = dma.done.wait (!%p736_p3), %s540_s6, 512  }
 0x1b0   : > { %845 = vsyncadd (!%p736_p3), %s540_s6, 4294966784  ;;  %s18_s20 = sadd.s32 1, %s868_s20   ;;  %s1100_s15 = smov %s852_s16 }
 0x1b1   : > { %p15_p4 = scmp.ge.s32.totalorder %s18_s20, 4   ;;  %s1101_s16 = smov %s856_s17 }
 0x1b2   : > { %s1102_s17 = smov %s951_s28  ;;  %s1103_s18 = smov %s864_s19 }
 0x1b3   : > { %s1104_s19 = smov %s1106_s23  ;;  %17 = sbr.rel (!%p15_p4) target bundleno = 4 (0x4), region = 91 }
 0x1ba   :  { %559 = vsyncpa [#allocation3], 1 }
 0x1bb   :  { %561 = vsyncpa [#allocation3 + $0x1], 1 }

</bundles_post_ra>
